<compile_context>
chip_gen: v5e
topology: v5e:2x2
jax: 0.10.0
libtpu: 0.0.40
codegen_flags: <defaults>
</compile_context>

<pallas_src>
import jax
import jax.numpy as jnp
from jax import lax
from jax.experimental import pallas as pl
from jax.experimental.pallas import tpu as pltpu


# ----------------------------- Pallas kernels --------------------------------

def _input_proj_kernel(x_ref, w_ref, b_ref, o_ref):
    # One big hoisted matmul: (T*B, I) @ (I, 3*D*H) + bias.
    o_ref[...] = (
        jnp.dot(x_ref[...], w_ref[...], preferred_element_type=jnp.float32)
        + b_ref[...]
    )


def input_projection(x2d, w_cat, b_cat):
    """x2d: (T*B, I) f32; w_cat: (I, 3*D*H); b_cat: (1, 3*D*H)."""
    TB, _ = x2d.shape
    G = w_cat.shape[1]
    return pl.pallas_call(
        _input_proj_kernel,
        out_shape=jax.ShapeDtypeStruct((TB, G), jnp.float32),
    )(x2d, w_cat, b_cat)


def _gru_recurrence_kernel(gx_ref, lo_ref, hi_ref, whh_ref, bhh_ref,
                           out_ref, hn_ref):
    """Fused (bi)directional GRU recurrence over all T steps in one invocation.

    gx_ref : (T, B, 3*D*H)  precomputed input gates, gate-grouped columns
             [r_d0..r_dD | z_d0..z_dD | n_d0..n_dD]; backward-direction columns
             are already time-reversed so step t reads the right timestep.
    lo/hi  : (B, D*H) int32 per-hidden-column valid window [lo, hi) in
             processing-step index (forward: [0, len); backward: [T-len, T)).
    whh    : (D*H, 3*D*H) block-diagonal recurrent weights (gate-grouped cols).
    bhh    : (1, 3*D*H) recurrent bias (gate-grouped).
    out    : (T, B, D*H) hidden per processing step (zeros where invalid).
    hn     : (B, D*H) final hidden per direction.
    """
    T, B, G = gx_ref.shape
    DH = G // 3

    # loop-invariant loads, hoisted out of the recurrence
    lo = lo_ref[...]
    hi = hi_ref[...]
    whh = whh_ref[...]
    bhh = bhh_ref[...]

    def step(t, h):
        gx = gx_ref[t]                                          # (B, 3*D*H)
        gh = jnp.dot(h, whh, preferred_element_type=jnp.float32) + bhh
        r = jax.nn.sigmoid(gx[:, :DH] + gh[:, :DH])
        z = jax.nn.sigmoid(gx[:, DH:2 * DH] + gh[:, DH:2 * DH])
        n = jnp.tanh(gx[:, 2 * DH:] + r * gh[:, 2 * DH:])
        h_new = (1.0 - z) * n + z * h
        valid = (t >= lo) & (t < hi)                            # (B, D*H) bool
        h_upd = jnp.where(valid, h_new, h)                      # freeze outside
        out_ref[pl.ds(t, 1)] = jnp.where(valid, h_upd, 0.0)[None]  # zero-pad
        return h_upd

    h0 = jnp.zeros((B, DH), jnp.float32)
    h_final = lax.fori_loop(0, T, step, h0, unroll=2)
    hn_ref[...] = h_final                                       # written once


def gru_layer(gx_proc, lo, hi, whh_bd, bhh_cat):
    T, B, G = gx_proc.shape
    DH = G // 3
    out, hn = pl.pallas_call(
        _gru_recurrence_kernel,
        out_shape=(jax.ShapeDtypeStruct((T, B, DH), jnp.float32),
                   jax.ShapeDtypeStruct((B, DH), jnp.float32)),
    )(gx_proc, lo, hi, whh_bd, bhh_cat)
    return out, hn


# ------------------------------ Encoder glue ---------------------------------

def _prep_layer_params(gru_params, layer, num_dir, H):
    """Build fused, gate-grouped parameter tensors for one GRU layer.

    Gate axis (width 3*D*H) column order: [r_d0..r_dD | z_d0..z_dD | n_d0..n_dD].
    """
    DH = num_dir * H
    wih_cols, bih_cols, bhh_cols = [], [], []
    whh_bd = jnp.zeros((DH, 3 * DH), jnp.float32)
    for g in range(3):
        for d in range(num_dir):
            w_ih, w_hh, b_ih, b_hh = gru_params[(layer, d)]
            w_ih = jnp.asarray(w_ih, jnp.float32)
            w_hh = jnp.asarray(w_hh, jnp.float32)
            wih_cols.append(w_ih[g * H:(g + 1) * H, :].T)          # (I, H)
            bih_cols.append(jnp.asarray(b_ih, jnp.float32)[g * H:(g + 1) * H])
            bhh_cols.append(jnp.asarray(b_hh, jnp.float32)[g * H:(g + 1) * H])
            col0 = g * DH + d * H
            whh_bd = whh_bd.at[d * H:(d + 1) * H, col0:col0 + H].set(
                w_hh[g * H:(g + 1) * H, :].T)
    wih_cat = jnp.concatenate(wih_cols, axis=1)                    # (I, 3*D*H)
    bih_cat = jnp.concatenate(bih_cols).reshape(1, -1)             # (1, 3*D*H)
    bhh_cat = jnp.concatenate(bhh_cols).reshape(1, -1)             # (1, 3*D*H)
    return wih_cat, bih_cat, whh_bd, bhh_cat


def encoder_forward(params, input_ids, lengths, num_layers, bidirectional):
    """Mirrors Encoder.forward (eval mode): returns (hn, output)."""
    num_dir = 2 if bidirectional else 1
    embed = jnp.take(params["embedding"], input_ids, axis=0).astype(jnp.float32)
    T, B, _ = embed.shape
    H = params["gru"][(0, 0)][1].shape[1]
    DH = num_dir * H
    lengths = lengths.astype(jnp.int32)

    # Per-hidden-column valid window in processing-step index.
    lo_parts, hi_parts = [], []
    for d in range(num_dir):
        if d == 0:   # forward: valid for t in [0, len)
            lo_parts.append(jnp.zeros((B, H), jnp.int32))
            hi_parts.append(jnp.broadcast_to(lengths[:, None], (B, H)))
        else:        # backward (time-reversed): valid for t in [T - len, T)
            lo_parts.append(jnp.broadcast_to((T - lengths)[:, None], (B, H)))
            hi_parts.append(jnp.full((B, H), T, jnp.int32))
    lo = jnp.concatenate(lo_parts, axis=1).astype(jnp.int32)
    hi = jnp.concatenate(hi_parts, axis=1).astype(jnp.int32)

    layer_in = embed
    hns = []
    for layer in range(num_layers):
        wih_cat, bih_cat, whh_bd, bhh_cat = _prep_layer_params(
            params["gru"], layer, num_dir, H)

        # Hoisted input projection for BOTH directions in one matmul.
        I = layer_in.shape[-1]
        gx = input_projection(layer_in.reshape(T * B, I), wih_cat, bih_cat)
        gx = gx.reshape(T, B, 3 * DH)

        if num_dir > 1:
            # Time-reverse the backward-direction columns so the kernel's
            # processing step t reads the correct timestep for each direction.
            gx_rev = gx[::-1]
            pieces = []
            for g in range(3):
                for d in range(num_dir):
                    src = gx if d == 0 else gx_rev
                    pieces.append(src[:, :, g * DH + d * H: g * DH + (d + 1) * H])
            gx = jnp.concatenate(pieces, axis=-1)

        out_proc, hn_cat = gru_layer(gx, lo, hi, whh_bd, bhh_cat)

        dir_outs = []
        for d in range(num_dir):
            o_d = out_proc[:, :, d * H:(d + 1) * H]
            dir_outs.append(o_d if d == 0 else o_d[::-1])   # back to time order
            hns.append(hn_cat[:, d * H:(d + 1) * H])
        layer_in = jnp.concatenate(dir_outs, axis=-1)
        # NOTE: nn.GRU inter-layer dropout is active only in training; skipped.

    output = layer_in                        # (T, B, D*H)
    hn = jnp.stack(hns, axis=0)              # (num_layers * D, B, H)
    return hn, output


# --------------------------- pure-JAX reference ------------------------------

def _ref_gru_pass(x, mask, w_ih, w_hh, b_ih, b_hh, reverse):
    T, B, _ = x.shape
    H = w_hh.shape[1]
    h = jnp.zeros((B, H), jnp.float32)
    out = jnp.zeros((T, B, H), jnp.float32)
    ts = range(T - 1, -1, -1) if reverse else range(T)
    for t in ts:
        gx = x[t] @ w_ih.T + b_ih
        gh = h @ w_hh.T + b_hh
        r = jax.nn.sigmoid(gx[:, :H] + gh[:, :H])
        z = jax.nn.sigmoid(gx[:, H:2 * H] + gh[:, H:2 * H])
        n = jnp.tanh(gx[:, 2 * H:] + r * gh[:, 2 * H:])
        h_new = (1.0 - z) * n + z * h
        valid = mask[t] > 0.0
        h = jnp.where(valid, h_new, h)
        out = out.at[t].set(jnp.where(valid, h, 0.0))
    return out, h


def ref_encoder_forward(params, input_ids, lengths, num_layers, bidirectional):
    num_dir = 2 if bidirectional else 1
    embed = jnp.take(params["embedding"], input_ids, axis=0).astype(jnp.float32)
    T, B, _ = embed.shape
    mask = (jnp.arange(T)[:, None] < lengths[None, :]).astype(jnp.float32)[..., None]
    layer_in = embed
    hns = []
    for layer in range(num_layers):
        outs = []
        for d in range(num_dir):
            w_ih, w_hh, b_ih, b_hh = params["gru"][(layer, d)]
            o, hn = _ref_gru_pass(layer_in, mask, w_ih, w_hh, b_ih, b_hh,
                                  reverse=(d == 1))
            outs.append(o)
            hns.append(hn)
        layer_in = jnp.concatenate(outs, axis=-1)
    return jnp.stack(hns, axis=0), layer_in


# --------------------------------- main ---------------------------------------

def init_params(key, vocab, input_size, hidden_size, num_layers, bidirectional):
    num_dir = 2 if bidirectional else 1
    assert hidden_size % num_dir == 0
    h_dir = hidden_size // num_dir
    k = 1.0 / jnp.sqrt(h_dir)
    params = {}
    key, ek = jax.random.split(key)
    params["embedding"] = jax.random.normal(ek, (vocab, input_size), jnp.float32) * 0.1
    gru = {}
    for layer in range(num_layers):
        in_sz = input_size if layer == 0 else h_dir * num_dir
        for d in range(num_dir):
            key, k1, k2, k3, k4 = jax.random.split(key, 5)
            w_ih = jax.random.uniform(k1, (3 * h_dir, in_sz), jnp.float32, -k, k)
            w_hh = jax.random.uniform(k2, (3 * h_dir, h_dir), jnp.float32, -k, k)
            b_ih = jax.random.uniform(k3, (3 * h_dir,), jnp.float32, -k, k)
            b_hh = jax.random.uniform(k4, (3 * h_dir,), jnp.float32, -k, k)
            gru[(layer, d)] = (w_ih, w_hh, b_ih, b_hh)
    params["gru"] = gru
    return params


if __name__ == "__main__":
    vocab = 20
    input_size = 16       # embedding dim / GRU input_size
    hidden_size = 32      # total hidden (split across directions)
    num_layers = 2
    bidirectional = True
    T, B = 8, 2

    key = jax.random.PRNGKey(0)
    params = init_params(key, vocab, input_size, hidden_size, num_layers,
                         bidirectional)

    key, ik = jax.random.split(key)
    input_ids = jax.random.randint(ik, (T, B), 0, vocab, dtype=jnp.int32)
    lengths = jnp.array([8, 5], dtype=jnp.int32)   # sorted descending, max == T

    hn, output = encoder_forward(params, input_ids, lengths, num_layers,
                                 bidirectional)
    hn = jax.block_until_ready(hn)
    output = jax.block_until_ready(output)

    hn_ref, out_ref = ref_encoder_forward(params, input_ids, lengths,
                                          num_layers, bidirectional)

    assert hn.shape == (num_layers * 2, B, hidden_size // 2)
    assert output.shape == (T, B, hidden_size)
    assert jnp.allclose(hn, hn_ref, atol=2e-5, rtol=2e-5)
    assert jnp.allclose(output, out_ref, atol=2e-5, rtol=2e-5)

    print("KERNEL_OK")
</pallas_src>

<mosaic_0001>
module attributes {stable_mosaic.version = 11 : i64} {
  func.func @_input_proj_kernel(%arg0: memref<16x16xf32, #tpu.memory_space<vmem>>, %arg1: memref<16x96xf32, #tpu.memory_space<vmem>>, %arg2: memref<1x96xf32, #tpu.memory_space<vmem>>, %arg3: memref<16x96xf32, #tpu.memory_space<vmem>>) attributes {dimension_semantics = [], scalar_prefetch = 0 : i64, scratch_operands = 0 : i64, tpu.core_type = #tpu.core_type<tc>} {
    %c0 = arith.constant 0 : index
    %c0_0 = arith.constant 0 : index
    %0 = vector.load %arg0[%c0, %c0_0] : memref<16x16xf32, #tpu.memory_space<vmem>>, vector<16x16xf32>
    %c0_1 = arith.constant 0 : index
    %c0_2 = arith.constant 0 : index
    %1 = vector.load %arg1[%c0_1, %c0_2] : memref<16x96xf32, #tpu.memory_space<vmem>>, vector<16x96xf32>
    %cst = arith.constant dense<0.000000e+00> : vector<16x96xf32>
    %2 = tpu.matmul %0, %1, %cst {dimension_numbers = #tpu.dot_dimension_numbers<[1], [0], [0], [1], [0, 0, 1, 1], [], []>} : vector<16x16xf32>, vector<16x96xf32>, vector<16x96xf32> -> vector<16x96xf32>
    %c0_3 = arith.constant 0 : index
    %c0_4 = arith.constant 0 : index
    %3 = vector.load %arg2[%c0_3, %c0_4] : memref<1x96xf32, #tpu.memory_space<vmem>>, vector<1x96xf32>
    %4 = vector.broadcast %3 : vector<1x96xf32> to vector<16x96xf32>
    %5 = arith.addf %2, %4 : vector<16x96xf32>
    %c0_5 = arith.constant 0 : index
    %c0_6 = arith.constant 0 : index
    %6 = vector.load %arg3[%c0_5, %c0_6] : memref<16x96xf32, #tpu.memory_space<vmem>>, vector<16x96xf32>
    tpu.vector_store %arg3[%c0_5, %c0_6], %5 {strides = array<i32>} : memref<16x96xf32, #tpu.memory_space<vmem>>, vector<16x96xf32>,
    return
  }
}

</mosaic_0001>

<bundles_post_ra>
// kernel: tpu_custom_call.1
= control target key start
LH: loop header
LB: loop body
LE: loop exit
PB: predicated region body
PF: predicated region fallthrough
CT: control target
= control target key end

     0   :  { %8 = vsyncpa [#allocation3], 0  ;;  %s242_s0 = inlined_call_operand.hbm [shape: f32[16,16], index: 0, kind: input, shape index: {}]   ;;  %s243_s1 = inlined_call_operand.hbm [shape: f32[16,96], index: 1, kind: input, shape index: {}]   ;;  %s244_s2 = inlined_call_operand.vmem [shape: f32[1,96], index: 2, kind: input, shape index: {}]   ;;  %s245_s3 = inlined_call_operand.hbm [shape: f32[16,96], index: 3, kind: output, shape index: {}]  }
   0x1   :  { %9 = vsyncpa [#allocation6], 0 }
   0x2   :  { %10 = vsyncpa [#allocation4], 0  ;;  %s15_s14 = sshll.u32 %s242_s0, 4  ;;  %s196_s15 = smov [#allocation2]   ;;  %s16_s14 = int_to_ptr.hbm [resolvable:$true] %s15_s14 }
   0x3   :  { %s17_s16 = sshll.u32 %s196_s15, 4  ;;  %s28_s19 = sshll.u32 %s243_s1, 4  ;;  %s18_s16 = int_to_ptr.vmem [resolvable:$true] %s17_s16  ;;  %s29_s19 = int_to_ptr.hbm [resolvable:$true] %s28_s19 }
   0x4   :  { %s197_s20 = smov 128   ;;  %s198_s21 = smov 8  }
   0x5   :  { %23 = dma.hbm_to_vmem [thread:$0]  %s16_s14, 256, %s18_s16, [#allocation3], %s197_s20, %s197_s20, %s198_s21  }
   0x6   :  { %s199_s22 = smov [#allocation5]  }
   0x7   :  { %s30_s23 = sshll.u32 %s199_s22, 4  ;;  %s31_s23 = int_to_ptr.vmem [resolvable:$true] %s30_s23 }
   0x8   :  { %36 = dma.hbm_to_vmem [thread:$0]  %s29_s19, 256, %s31_s23, [#allocation6], %s197_s20, %s197_s20, %s198_s21  }
   0x9   :  { %190 = dma.done.wait [#allocation3], 256  }
   0xa   :  { %191 = vsyncadd [#allocation3], 4294967040 }
   0xb   :  { %192 = dma.done.wait [#allocation6], 256  }
   0xc   :  { %193 = vsyncadd [#allocation6], 4294967040  ;;  %v50_v0 = vld [vmem:[#allocation5 + $0x8] sm:$0xff]  ;;  %v49_v1 = vld [vmem:[#allocation5] sm:$0xff]  ;;  %vm55_vm0 = vcmask 130048   ;;  %s200_s24 = smov [#allocation7]  }
   0xd   :  { %76 = vmatpush.msra.mxu0 %v50_v0  ;;  %110 = vmatpush.msra.mxu1 %v50_v0  ;;  %v47_v2 = vld [vmem:[#allocation2] sm:$0xff]  ;;  %v48_v3 = vld [vmem:[#allocation2 + $0x8] sm:$0xff]  ;;  %s92_s25 = sshll.u32 %s200_s24, 4  ;;  %s94_s28 = sshll.u32 %s245_s3, 4  ;;  %vm85_vm1 = vcmask 785408   ;;  %s93_s25 = int_to_ptr.vmem [resolvable:$true] %s92_s25  ;;  %s95_s28 = int_to_ptr.hbm [resolvable:$true] %s94_s28 }
   0xe   :  { %v117_v4 = vld [vmem:[%s244_s2] ss:$0 sm:$0xff] }
   0xf   :  { %77 = vmatpush.msra.mxu0 %v49_v1  ;;  %111 = vmatpush.msra.mxu1 %v49_v1 }
  0x10   :  { %108 = vmatmul.msk.f32.vlgmr.msra.gmra.mxu0 %vm55_vm0, %v47_v2  ;;  %109 = vmatmul.msk.f32.vlgmr.msra.gmra.mxu1 %vm55_vm0, %v48_v3 }
  0x8d   :  { %v79_v5 = vpop.f32.mrf.mxu0  ;;  %v82_v6 = vpop.f32.mrf.mxu1 }
  0x8e   :  { %v80_v7 = vadd.f32 %v117_v4, %v79_v5  ;;  %v83_v8 = vadd.f32 %v117_v4, %v82_v6 }
  0x90   :  { %86 = vst.msk [vmem:[#allocation7] sm:$0xff] %vm85_vm1, %v80_v7 }
  0x91   :  { %87 = vst.msk [vmem:[#allocation7 + $0x8] sm:$0xff] %vm85_vm1, %v83_v8 }
  0x92   :  { %100 = dma.vmem_to_hbm [thread:$0]  %s93_s25, 256, %s95_s28, [#allocation4], %s197_s20, %s197_s20, %s198_s21  }
  0x93   :  { %194 = dma.done.wait [#allocation4], 256  }
  0x94   :  { %195 = vsyncadd [#allocation4], 4294967040 }
  0x95   :  { %105 = vsyncpa [#allocation3], 1 }
  0x96   :  { %106 = vsyncpa [#allocation6], 1 }
  0x97   :  { %107 = vsyncpa [#allocation4], 1 }

</bundles_post_ra>
